<compile_context>
chip_gen: v6e
topology: v6e:2x2x1
jax: 0.10.0
libtpu: 0.0.40
codegen_flags: <defaults>
</compile_context>

<pallas_src>
import functools

import jax
import jax.numpy as jnp
from jax.experimental import pallas as pl
from jax.experimental.pallas import tpu as pltpu


def _attention_decoder_kernel(
    x_ref, hs_ref, h0_ref, c0_ref, enc_ref,
    w_attn_ref, w_comb_ref, w_lstm_ref, w_out_ref, bias_ref,
    out_ref,
    *, hidden_size, input_len, output_size, out_lanes,
):
    H, L, O = hidden_size, input_len, output_size

    x = x_ref[...]          # (B, O)    f32
    hs = hs_ref[...]        # (B, H)    f32  reshaped ("scrambled") hidden used for attention
    h0 = h0_ref[...]        # (B, H)    f32  original hidden fed to the LSTM
    c0 = c0_ref[...]        # (B, H)    f32
    enc = enc_ref[...]      # (B, L, H) f32
    B = x.shape[0]

    # Biases, packed row-wise in one slab (row0: attn, row1: combine, row2: lstm, row3: out).
    b_attn = bias_ref[0:1, 0:L]        # (1, L)
    b_comb = bias_ref[1:2, 0:H]        # (1, H)
    b_lstm = bias_ref[2:3, 0:4 * H]    # (1, 4H)
    b_out = bias_ref[3:4, 0:O]         # (1, O)

    # attn_weights = softmax(attn(cat([x, h], 1)), dim=1)  -- single fused matmul.
    xh = jnp.concatenate([x, hs], axis=1).astype(jnp.bfloat16)             # (B, O+H)
    logits = jnp.dot(xh, w_attn_ref[...], preferred_element_type=jnp.float32) + b_attn
    logits = logits - jnp.max(logits, axis=1, keepdims=True)
    e = jnp.exp(logits)
    attn_w = e * pl.reciprocal(jnp.sum(e, axis=1, keepdims=True), approx=True)   # (B, L)

    # attn_applied = einsum('ij,ijk->ik', attn_w, enc): VPU broadcast-mul + XLU reduce
    # (deliberately NOT converted to 8 tiny batched MXU matmuls).
    attn_applied = jnp.sum(attn_w[:, :, None] * enc, axis=1)               # (B, H) f32

    # lstm_in = relu(attn_combine(cat([x, attn_applied], 1)))  -- single fused matmul.
    xa = jnp.concatenate([x, attn_applied], axis=1).astype(jnp.bfloat16)   # (B, O+H)
    comb = jnp.dot(xa, w_comb_ref[...], preferred_element_type=jnp.float32) + b_comb
    lstm_in = jnp.maximum(comb, 0.0)                                       # (B, H)

    # Single-step LSTM cell with W_ih|W_hh fused along K (PyTorch gate order i, f, g, o).
    lh = jnp.concatenate([lstm_in, h0], axis=1).astype(jnp.bfloat16)       # (B, 2H)
    gates = jnp.dot(lh, w_lstm_ref[...], preferred_element_type=jnp.float32) + b_lstm  # (B, 4H)

    # Full-tile activations on the EUP (free slot), then static lane slices of the results.
    sg = jax.nn.sigmoid(gates)
    tg = jnp.tanh(gates)
    i_g = sg[:, 0:H]
    f_g = sg[:, H:2 * H]
    g_g = tg[:, 2 * H:3 * H]
    o_g = sg[:, 3 * H:4 * H]
    c_new = f_g * c0 + i_g * g_g
    h_new = o_g * jnp.tanh(c_new)

    # prediction = output_layer(output).squeeze(1)
    pred = jnp.dot(h_new.astype(jnp.bfloat16), w_out_ref[...],
                   preferred_element_type=jnp.float32) + b_out             # (B, O)

    # Pack [pred | h_n | c_n | zero pad] into one lane-dense slab; split in the wrapper.
    pieces = [pred, h_new, c_new]
    pad = out_lanes - (O + 2 * H)
    if pad:
        pieces.append(jnp.zeros((B, pad), jnp.float32))
    out_ref[...] = jnp.concatenate(pieces, axis=1)


def init_params(key, input_len, output_size, hidden_size):
    """Deterministic synthetic parameters with PyTorch-like shapes."""
    O, H, L = output_size, hidden_size, input_len
    ks = jax.random.split(key, 10)

    def u(k, shape, fan_in):
        bound = 1.0 / jnp.sqrt(jnp.float32(fan_in))
        return jax.random.uniform(k, shape, jnp.float32, -bound, bound)

    return {
        "w_attn": u(ks[0], (L, H + O), H + O),     # nn.Linear(H+O, L)
        "b_attn": u(ks[1], (L,), H + O),
        "w_comb": u(ks[2], (H, H + O), H + O),     # nn.Linear(H+O, H)
        "b_comb": u(ks[3], (H,), H + O),
        "w_ih": u(ks[4], (4 * H, H), H),           # LSTM weight_ih_l0
        "b_ih": u(ks[5], (4 * H,), H),
        "w_hh": u(ks[6], (4 * H, H), H),           # LSTM weight_hh_l0
        "b_hh": u(ks[7], (4 * H,), H),
        "w_out": u(ks[8], (O, H), H),              # nn.Linear(H, O)
        "b_out": u(ks[9], (O,), H),
    }


def attention_decoder_forward(x, hidden, encoder_outputs, params):
    """Mirrors AttentionDecoder.forward. hidden = (h0, c0), each (B, H)."""
    h0, c0 = hidden
    B, O = x.shape
    H = h0.shape[1]
    L = encoder_outputs.shape[1]

    # h = hidden[0]; h = h.reshape(h.shape[1], -1).transpose(1, 0)
    # (row-major reshape exactly as PyTorch does it on the (B, H) hidden — scrambles unless B == H)
    h_scr = jnp.transpose(jnp.reshape(h0, (H, -1)), (1, 0))                # (B, H)

    # Pre-transposed / pair-fused weights; bf16 MXU operands, f32 accumulation in-kernel.
    w_attn = params["w_attn"].T.astype(jnp.bfloat16)                       # (O+H, L)
    w_comb = params["w_comb"].T.astype(jnp.bfloat16)                       # (O+H, H)
    w_lstm = jnp.concatenate(
        [params["w_ih"].T, params["w_hh"].T], axis=0).astype(jnp.bfloat16) # (2H, 4H)
    w_out = params["w_out"].T.astype(jnp.bfloat16)                         # (H, O)

    # All four bias vectors packed into one (8, b_lanes) f32 slab (single input DMA).
    b_lanes = max(((max(L, H, 4 * H, O) + 127) // 128) * 128, 128)
    bias_slab = jnp.zeros((8, b_lanes), jnp.float32)
    bias_slab = bias_slab.at[0, :L].set(params["b_attn"])
    bias_slab = bias_slab.at[1, :H].set(params["b_comb"])
    bias_slab = bias_slab.at[2, :4 * H].set(params["b_ih"] + params["b_hh"])
    bias_slab = bias_slab.at[3, :O].set(params["b_out"])

    out_lanes = ((O + 2 * H + 127) // 128) * 128
    vmem_spec = pl.BlockSpec(memory_space=pltpu.MemorySpace.VMEM)

    # TODO(synk): if this single step is driven by an outer decode loop, move the step
    # loop in-kernel as an "arbitrary" grid axis (constant index_maps keep all weights
    # VMEM-resident; carry h/c in scratch with input_output_aliases) to amortize the
    # weight DMAs and MXU weight pushes across steps.
    packed = pl.pallas_call(
        functools.partial(
            _attention_decoder_kernel,
            hidden_size=H, input_len=L, output_size=O, out_lanes=out_lanes),
        out_shape=jax.ShapeDtypeStruct((B, out_lanes), jnp.float32),
        in_specs=[vmem_spec] * 10,
        out_specs=vmem_spec,
    )(
        x, h_scr, h0, c0, encoder_outputs,
        w_attn, w_comb, w_lstm, w_out, bias_slab,
    )

    pred = packed[:, :O]
    h_n = packed[:, O:O + H]
    c_n = packed[:, O + H:O + 2 * H]
    # decoder_hidden mirrors PyTorch's (1, B, H) layer-major hidden tuple.
    return pred, (h_n[None, :, :], c_n[None, :, :])


def _reference_forward(x, hidden, encoder_outputs, params):
    """Pure-JAX f32 mirror of the PyTorch module (loose numerical check only)."""
    h0, c0 = hidden
    H = h0.shape[1]
    h_scr = jnp.transpose(jnp.reshape(h0, (H, -1)), (1, 0))
    logits = jnp.concatenate([x, h_scr], axis=1) @ params["w_attn"].T + params["b_attn"]
    attn_w = jax.nn.softmax(logits, axis=1)
    attn_applied = jnp.einsum("ij,ijk->ik", attn_w, encoder_outputs)
    comb = jnp.concatenate([x, attn_applied], axis=1) @ params["w_comb"].T + params["b_comb"]
    lstm_in = jnp.maximum(comb, 0.0)
    gates = (lstm_in @ params["w_ih"].T + params["b_ih"]
             + h0 @ params["w_hh"].T + params["b_hh"])
    i_g = jax.nn.sigmoid(gates[:, :H])
    f_g = jax.nn.sigmoid(gates[:, H:2 * H])
    g_g = jnp.tanh(gates[:, 2 * H:3 * H])
    o_g = jax.nn.sigmoid(gates[:, 3 * H:])
    c_n = f_g * c0 + i_g * g_g
    h_n = o_g * jnp.tanh(c_n)
    pred = h_n @ params["w_out"].T + params["b_out"]
    return pred, (h_n[None], c_n[None])


if __name__ == "__main__":
    B = 8            # batch
    L = 16           # input_len (encoder sequence length)
    O = 16           # output_size
    H = 32           # hidden_size

    key = jax.random.PRNGKey(0)
    k_param, k_x, k_h, k_c, k_enc = jax.random.split(key, 5)

    params = init_params(k_param, L, O, H)
    x = jax.random.normal(k_x, (B, O), jnp.float32)
    h0 = jax.random.normal(k_h, (B, H), jnp.float32)
    c0 = jax.random.normal(k_c, (B, H), jnp.float32)
    encoder_outputs = jax.random.normal(k_enc, (B, L, H), jnp.float32)

    fwd = jax.jit(attention_decoder_forward)
    pred, (h_n, c_n) = fwd(x, (h0, c0), encoder_outputs, params)
    jax.block_until_ready((pred, h_n, c_n))

    assert pred.shape == (B, O)
    assert h_n.shape == (1, B, H) and c_n.shape == (1, B, H)

    # Loose check vs a pure-JAX f32 reference (kernel matmuls intentionally run in bf16).
    pred_r, (h_r, c_r) = _reference_forward(x, (h0, c0), encoder_outputs, params)
    assert jnp.allclose(pred, pred_r, atol=0.15, rtol=0.15)
    assert jnp.allclose(h_n, h_r, atol=0.15, rtol=0.15)
    assert jnp.allclose(c_n, c_r, atol=0.15, rtol=0.15)

    print("KERNEL_OK")
</pallas_src>

<mosaic_0001>
module attributes {stable_mosaic.version = 11 : i64} {
  func.func @_attention_decoder_kernel(%arg0: memref<8x16xf32, #tpu.memory_space<vmem>>, %arg1: memref<8x32xf32, #tpu.memory_space<vmem>>, %arg2: memref<8x32xf32, #tpu.memory_space<vmem>>, %arg3: memref<8x32xf32, #tpu.memory_space<vmem>>, %arg4: memref<8x16x32xf32, #tpu.memory_space<vmem>>, %arg5: memref<48x16xbf16, #tpu.memory_space<vmem>>, %arg6: memref<48x32xbf16, #tpu.memory_space<vmem>>, %arg7: memref<64x128xbf16, #tpu.memory_space<vmem>>, %arg8: memref<32x16xbf16, #tpu.memory_space<vmem>>, %arg9: memref<8x128xf32, #tpu.memory_space<vmem>>, %arg10: memref<8x128xf32, #tpu.memory_space<vmem>>) attributes {dimension_semantics = [], scalar_prefetch = 0 : i64, scratch_operands = 0 : i64, tpu.core_type = #tpu.core_type<tc>} {
    %c0 = arith.constant 0 : index
    %c0_0 = arith.constant 0 : index
    %0 = vector.load %arg0[%c0, %c0_0] : memref<8x16xf32, #tpu.memory_space<vmem>>, vector<8x16xf32>
    %c0_1 = arith.constant 0 : index
    %c0_2 = arith.constant 0 : index
    %1 = vector.load %arg1[%c0_1, %c0_2] : memref<8x32xf32, #tpu.memory_space<vmem>>, vector<8x32xf32>
    %c0_3 = arith.constant 0 : index
    %c0_4 = arith.constant 0 : index
    %2 = vector.load %arg2[%c0_3, %c0_4] : memref<8x32xf32, #tpu.memory_space<vmem>>, vector<8x32xf32>
    %c0_5 = arith.constant 0 : index
    %c0_6 = arith.constant 0 : index
    %3 = vector.load %arg3[%c0_5, %c0_6] : memref<8x32xf32, #tpu.memory_space<vmem>>, vector<8x32xf32>
    %c0_7 = arith.constant 0 : index
    %c0_8 = arith.constant 0 : index
    %c0_9 = arith.constant 0 : index
    %4 = vector.load %arg4[%c0_7, %c0_8, %c0_9] : memref<8x16x32xf32, #tpu.memory_space<vmem>>, vector<8x16x32xf32>
    %c0_10 = arith.constant 0 : index
    %c0_11 = arith.constant 0 : index
    %5 = vector.load %arg9[%c0_10, %c0_11] : memref<8x128xf32, #tpu.memory_space<vmem>>, vector<1x16xf32>
    %c1 = arith.constant 1 : index
    %c0_12 = arith.constant 0 : index
    %6 = vector.load %arg9[%c1, %c0_12] : memref<8x128xf32, #tpu.memory_space<vmem>>, vector<1x32xf32>
    %c2 = arith.constant 2 : index
    %c0_13 = arith.constant 0 : index
    %7 = vector.load %arg9[%c2, %c0_13] : memref<8x128xf32, #tpu.memory_space<vmem>>, vector<1x128xf32>
    %c3 = arith.constant 3 : index
    %c0_14 = arith.constant 0 : index
    %8 = vector.load %arg9[%c3, %c0_14] : memref<8x128xf32, #tpu.memory_space<vmem>>, vector<1x16xf32>
    %9 = tpu.concatenate %0, %1 in 1 : vector<8x16xf32>, vector<8x32xf32> -> vector<8x48xf32>
    %10 = arith.truncf %9 : vector<8x48xf32> to vector<8x48xbf16>
    %c0_15 = arith.constant 0 : index
    %c0_16 = arith.constant 0 : index
    %11 = vector.load %arg5[%c0_15, %c0_16] : memref<48x16xbf16, #tpu.memory_space<vmem>>, vector<48x16xbf16>
    %cst = arith.constant dense<0.000000e+00> : vector<8x16xf32>
    %12 = tpu.matmul %10, %11, %cst {dimension_numbers = #tpu.dot_dimension_numbers<[1], [0], [0], [1], [0, 0, 1, 1], [], []>} : vector<8x48xbf16>, vector<48x16xbf16>, vector<8x16xf32> -> vector<8x16xf32>
    %13 = vector.broadcast %5 : vector<1x16xf32> to vector<8x16xf32>
    %14 = arith.addf %12, %13 : vector<8x16xf32>
    %cst_17 = arith.constant dense<0xFF800000> : vector<8xf32>
    %15 = vector.multi_reduction <maximumf>, %14, %cst_17 [1] : vector<8x16xf32> to vector<8xf32>
    %16 = vector.shape_cast %15 : vector<8xf32> to vector<8x1xf32>
    %17 = vector.broadcast %16 : vector<8x1xf32> to vector<8x16xf32>
    %18 = arith.subf %14, %17 : vector<8x16xf32>
    %19 = math.exp %18 : vector<8x16xf32>
    %cst_18 = arith.constant dense<0.000000e+00> : vector<8xf32>
    %20 = vector.multi_reduction <add>, %19, %cst_18 [1] : vector<8x16xf32> to vector<8xf32>
    %21 = vector.shape_cast %20 : vector<8xf32> to vector<8x1xf32>
    %22 = tpu.reciprocal %21 {approx = true} : vector<8x1xf32> -> vector<8x1xf32>
    %23 = vector.broadcast %22 : vector<8x1xf32> to vector<8x16xf32>
    %24 = arith.mulf %19, %23 : vector<8x16xf32>
    %25 = vector.shape_cast %24 : vector<8x16xf32> to vector<8x16x1xf32>
    %26 = vector.broadcast %25 : vector<8x16x1xf32> to vector<8x16x32xf32>
    %27 = arith.mulf %26, %4 : vector<8x16x32xf32>
    %cst_19 = arith.constant dense<0.000000e+00> : vector<8x32xf32>
    %28 = vector.multi_reduction <add>, %27, %cst_19 [1] : vector<8x16x32xf32> to vector<8x32xf32>
    %29 = tpu.concatenate %0, %28 in 1 : vector<8x16xf32>, vector<8x32xf32> -> vector<8x48xf32>
    %30 = arith.truncf %29 : vector<8x48xf32> to vector<8x48xbf16>
    %c0_20 = arith.constant 0 : index
    %c0_21 = arith.constant 0 : index
    %31 = vector.load %arg6[%c0_20, %c0_21] : memref<48x32xbf16, #tpu.memory_space<vmem>>, vector<48x32xbf16>
    %cst_22 = arith.constant dense<0.000000e+00> : vector<8x32xf32>
    %32 = tpu.matmul %30, %31, %cst_22 {dimension_numbers = #tpu.dot_dimension_numbers<[1], [0], [0], [1], [0, 0, 1, 1], [], []>} : vector<8x48xbf16>, vector<48x32xbf16>, vector<8x32xf32> -> vector<8x32xf32>
    %33 = vector.broadcast %6 : vector<1x32xf32> to vector<8x32xf32>
    %34 = arith.addf %32, %33 : vector<8x32xf32>
    %cst_23 = arith.constant 0.000000e+00 : f32
    %35 = vector.broadcast %cst_23 : f32 to vector<8x32xf32>
    %36 = arith.maximumf %34, %35 : vector<8x32xf32>
    %37 = tpu.concatenate %36, %2 in 1 : vector<8x32xf32>, vector<8x32xf32> -> vector<8x64xf32>
    %38 = arith.truncf %37 : vector<8x64xf32> to vector<8x64xbf16>
    %c0_24 = arith.constant 0 : index
    %c0_25 = arith.constant 0 : index
    %39 = vector.load %arg7[%c0_24, %c0_25] : memref<64x128xbf16, #tpu.memory_space<vmem>>, vector<64x128xbf16>
    %cst_26 = arith.constant dense<0.000000e+00> : vector<8x128xf32>
    %40 = tpu.matmul %38, %39, %cst_26 {dimension_numbers = #tpu.dot_dimension_numbers<[1], [0], [0], [1], [0, 0, 1, 1], [], []>} : vector<8x64xbf16>, vector<64x128xbf16>, vector<8x128xf32> -> vector<8x128xf32>
    %41 = vector.broadcast %7 : vector<1x128xf32> to vector<8x128xf32>
    %42 = arith.addf %40, %41 : vector<8x128xf32>
    %43 = arith.negf %42 : vector<8x128xf32>
    %44 = math.exp %43 : vector<8x128xf32>
    %cst_27 = arith.constant 1.000000e+00 : f32
    %45 = vector.broadcast %cst_27 : f32 to vector<8x128xf32>
    %46 = arith.addf %45, %44 : vector<8x128xf32>
    %47 = arith.divf %45, %46 : vector<8x128xf32>
    %48 = math.tanh %42 : vector<8x128xf32>
    %49 = vector.extract_strided_slice %47 {offsets = [0, 0], sizes = [8, 32], strides = [1, 1]} : vector<8x128xf32> to vector<8x32xf32>
    %50 = vector.extract_strided_slice %47 {offsets = [0, 32], sizes = [8, 32], strides = [1, 1]} : vector<8x128xf32> to vector<8x32xf32>
    %51 = vector.extract_strided_slice %48 {offsets = [0, 64], sizes = [8, 32], strides = [1, 1]} : vector<8x128xf32> to vector<8x32xf32>
    %52 = vector.extract_strided_slice %47 {offsets = [0, 96], sizes = [8, 32], strides = [1, 1]} : vector<8x128xf32> to vector<8x32xf32>
    %53 = arith.mulf %50, %3 : vector<8x32xf32>
    %54 = arith.mulf %49, %51 : vector<8x32xf32>
    %55 = arith.addf %53, %54 : vector<8x32xf32>
    %56 = math.tanh %55 : vector<8x32xf32>
    %57 = arith.mulf %52, %56 : vector<8x32xf32>
    %58 = arith.truncf %57 : vector<8x32xf32> to vector<8x32xbf16>
    %c0_28 = arith.constant 0 : index
    %c0_29 = arith.constant 0 : index
    %59 = vector.load %arg8[%c0_28, %c0_29] : memref<32x16xbf16, #tpu.memory_space<vmem>>, vector<32x16xbf16>
    %cst_30 = arith.constant dense<0.000000e+00> : vector<8x16xf32>
    %60 = tpu.matmul %58, %59, %cst_30 {dimension_numbers = #tpu.dot_dimension_numbers<[1], [0], [0], [1], [0, 0, 1, 1], [], []>} : vector<8x32xbf16>, vector<32x16xbf16>, vector<8x16xf32> -> vector<8x16xf32>
    %61 = vector.broadcast %8 : vector<1x16xf32> to vector<8x16xf32>
    %62 = arith.addf %60, %61 : vector<8x16xf32>
    %cst_31 = arith.constant 0.000000e+00 : f32
    %63 = vector.broadcast %cst_31 : f32 to vector<8x48xf32>
    %64 = tpu.concatenate %62, %57, %55, %63 in 1 : vector<8x16xf32>, vector<8x32xf32>, vector<8x32xf32>, vector<8x48xf32> -> vector<8x128xf32>
    %c0_32 = arith.constant 0 : index
    %c0_33 = arith.constant 0 : index
    %65 = vector.load %arg10[%c0_32, %c0_33] : memref<8x128xf32, #tpu.memory_space<vmem>>, vector<8x128xf32>
    tpu.vector_store %arg10[%c0_32, %c0_33], %64 {strides = array<i32>} : memref<8x128xf32, #tpu.memory_space<vmem>>, vector<8x128xf32>,
    return
  }
}

</mosaic_0001>

<bundles_post_ra>
// kernel: attention_decoder_forward.1
= control target key start
LH: loop header
LB: loop body
LE: loop exit
PB: predicated region body
PF: predicated region fallthrough
CT: control target
= control target key end

     0   :  { %v731_v1 = vmov 0.0   ;;  %vm732_vm0 = vmmov 0   ;;  %s733_s15 = smov 16   ;;  %vm64_vm1 = vcmask 130048   ;;  %vm95_vm2 = vcmask 392192   ;;  %s734_s21 = smov 32   ;;  %s962_s1 = inlined_call_operand.vmem [shape: f32[8,32], index: 1, kind: input, shape index: {}]   ;;  %s963_s5 = inlined_call_operand.vmem [shape: bf16[48,16], index: 5, kind: input, shape index: {}]   ;;  %s964_s0 = inlined_call_operand.vmem [shape: f32[8,16], index: 0, kind: input, shape index: {}]   ;;  %s965_s9 = inlined_call_operand.vmem [shape: f32[8,128], index: 9, kind: input, shape index: {}]   ;;  %s966_s6 = inlined_call_operand.vmem [shape: bf16[48,32], index: 6, kind: input, shape index: {}]   ;;  %s967_s4 = inlined_call_operand.vmem [shape: f32[8,16,32], index: 4, kind: input, shape index: {}]   ;;  %s968_s2 = inlined_call_operand.vmem [shape: f32[8,32], index: 2, kind: input, shape index: {}]   ;;  %s969_s7 = inlined_call_operand.vmem [shape: bf16[64,128], index: 7, kind: input, shape index: {}]   ;;  %s970_s3 = inlined_call_operand.vmem [shape: f32[8,32], index: 3, kind: input, shape index: {}]   ;;  %s971_s8 = inlined_call_operand.vmem [shape: bf16[32,16], index: 8, kind: input, shape index: {}]   ;;  %s972_s10 = inlined_call_operand.vmem [shape: f32[8,128], index: 10, kind: output, shape index: {}]  }
   0x1   :  { %v37_v0 = vld [vmem:[%s962_s1] sm:$0xff]  ;;  %661 = vmatprep.subr.bf16.mxu0 %v731_v1  ;;  %667 = vmatprep.mubr.msk.bf16.mxu0 %vm732_vm0, %v731_v1  ;;  %v707_v2 = vld [vmem:[%s963_s5 + $0x10] sm:$0xff]   ;;  %v708_v3 = vld [vmem:[%s963_s5 + $0x8] sm:$0xff]   ;;  %v150_v22 = vlaneseq  ;;  %vm254_vm3 = vcmask 261120   ;;  %vm335_vm4 = vcmask 1041409   ;;  %vm337_vm5 = vcmask 1042434  }
   0x2   :  { %61 = vrot.lane.b32.xlu0 %v37_v0, %s733_s15  ;;  %671 = vmatprep.subr.bf16.mxu1 %v731_v1  ;;  %v709_v4 = vld [vmem:[%s963_s5] sm:$0xff]   ;;  %v710_v42 = vld [vmem:[%s966_s6 + $0x10] sm:$0xff]   ;;  %v711_v43 = vld [vmem:[%s966_s6 + $0x8] sm:$0xff]   ;;  %vm339_vm6 = vcmask 1043459   ;;  %vm341_vm7 = vcmask 1044484   ;;  %vm343_vm8 = vcmask 1045509  }
   0x3   :  { %677 = vmatprep.mubr.msk.bf16.mxu1 %vm732_vm0, %v731_v1  ;;  %662 = vmatpush3.bf16.msra.mxu0 %v707_v2  ;;  %v817_v5 = vld [vmem:[%s964_s0] sm:$0xff]  ;;  %v151_v23 = vshrl.u32 %v150_v22, 7  ;;  %v43_v49 = vld [vmem:[%s967_s4 + $0x18] sm:$0xff]  ;;  %v41_v51 = vld [vmem:[%s967_s4 + $0x8] sm:$0xff]  ;;  %vm345_vm9 = vcmask 1046534   ;;  %vm347_vm10 = vcmask 1047559  }
   0x4   :  { %663 = vmatprep.subr.bf16.mxu0 %v731_v1  ;;  %v624_v9 = vld [vmem:[%s965_s9] ss:$0 sm:$0xff]  ;;  %672 = vmatpush3.bf16.msra.mxu1 %v710_v42  ;;  %v42_v52 = vld [vmem:[%s967_s4 + $0x10] sm:$0xff]  ;;  %v45_v54 = vld [vmem:[%s967_s4 + $0x28] sm:$0xff]  ;;  %vm468_vm11 = vcmask 523264   ;;  %s735_s29 = smov 64  }
   0x5   :  { %v174_v24 = vsub.s32 2, %v151_v23  ;;  %v152_v25 = vsub.s32 0, %v151_v23  ;;  %v207_v30 = vsub.s32 5, %v151_v23  ;;  %v218_v32 = vsub.s32 6, %v151_v23  ;;  %673 = vmatprep.subr.bf16.mxu1 %v731_v1  ;;  %v44_v50 = vld [vmem:[%s967_s4 + $0x20] sm:$0xff]  ;;  %v46_v59 = vld [vmem:[%s967_s4 + $0x30] sm:$0xff] }
   0x6   :  { %v163_v33 = vsub.s32 1, %v151_v23  ;;  %v229_v36 = vsub.s32 7, %v151_v23  ;;  %v185_v38 = vsub.s32 3, %v151_v23  ;;  %v196_v40 = vsub.s32 4, %v151_v23  ;;  %v40_v57 = vld [vmem:[%s967_s4] sm:$0xff]  ;;  %v47_v60 = vld [vmem:[%s967_s4 + $0x38] sm:$0xff] }
   0x7   :  { %664 = vmatpush3.bf16.msra.mxu0 %v708_v3  ;;  %v51_v23 = vld [vmem:[%s967_s4 + $0x58] sm:$0xff]  ;;  %s736_s14 = smov 48   ;;  %vm617_vm12 = vcmask 654336  }
   0x8   :  { %665 = vmatprep.subr.bf16.mxu0 %v731_v1  ;;  %674 = vmatpush3.bf16.msra.mxu1 %v711_v43 }
   0x9   :  { %675 = vmatprep.subr.bf16.mxu1 %v731_v1 }
   0xb   :  { %666 = vmatpush3.bf16.msra.mxu0 %v709_v4 }
   0xc   :  { %681 = vmatprep.subr.bf16.mxu0 %v731_v1 }
  0x74   :  { %v62_v6 = vpop.permute.xlu0 %61 }
  0x75   :  { %v65_v7 = vsel %vm64_vm1, %v817_v5, %v62_v6 }
  0x76   :  { %v66_v8 = vpack.c.bf16 %v65_v7, %v65_v7 }
  0x78   :  { %668 = vmatmul.mubr.msk.bf16.vlgmr.msra.gmra.mxu0 %vm95_vm2, %v66_v8 }
  0x79   :  { %689 = vmatprep.mubr.msk.bf16.mxu0 %vm732_vm0, %v731_v1 }
 0x138   :  { %v133_v10 = vpop.f32.mrf.mxu0 }
 0x139   :  { %v134_v11 = vadd.f32 %v624_v9, %v133_v10 }
 0x13a   :  { %v669_v12 = vpop.f32.mrf.mxu0 }
 0x13b   :  { %v139_v13 = vsel %vm64_vm1, %v134_v11, -inf }
 0x13c   :  { %140 = vmax.xlane.f32.xlu0 %v139_v13  ;;  %v136_v14 = vpop.f32.mrf.mxu0 }
 0x13d   :  { %v48_v14 = vld [vmem:[%s967_s4 + $0x40] sm:$0xff] }
 0x13e   :  { %v670_v15 = vpop.f32.mrf.mxu0 }
 0x1c5   :  { %v141_v16 = vpop.xlane.xlu0 %140 }
 0x1c6   :  { %v142_v17 = vsub.f32 %v134_v11, %v141_v16 }
 0x1c8   :  { %v143_v18 = vmul.f32 1.442695, %v142_v17 }
 0x1ca   :  { %719 = vpow2.f32 %v143_v18 }
 0x1d7   :  { %v720_v19 = vpop.eup %719 }
 0x1d8   :  { %v145_v20 = vsel %vm64_vm1, %v720_v19, 0.0 }
 0x1d9   :  { %146 = vadd.xlane.f32.xlu1 %v145_v20 }
 0x262   :  { %v147_v21 = vpop.xlane.xlu1 %146 }
 0x263   :  { %721 = vrcp.f32 %v147_v21  ;;  %v49_v21 = vld [vmem:[%s967_s4 + $0x48] sm:$0xff] }
 0x270   :  { %v722_v26 = vpop.eup %721 }
 0x271   :  { %v149_v27 = vmul.f32 %v722_v26, %v720_v19 }
 0x273   :  { %v175_v28 = vrot.slane %v149_v27, %v174_v24  ;;  %v153_v29 = vrot.slane %v149_v27, %v152_v25  ;;  %v208_v31 = vrot.slane %v149_v27, %v207_v30  ;;  %v219_v34 = vrot.slane %v149_v27, %v218_v32 }
 0x274   :  { %v164_v35 = vrot.slane %v149_v27, %v163_v33  ;;  %v230_v37 = vrot.slane %v149_v27, %v229_v36  ;;  %v186_v39 = vrot.slane %v149_v27, %v185_v38  ;;  %v197_v41 = vrot.slane %v149_v27, %v196_v40 }
 0x275   :  { %181 = vbcast.lane.b32.xlu0 %v175_v28, 264  ;;  %155 = vbcast.lane.b32.xlu1 %v153_v29, 256 }
 0x279   :  { %214 = vbcast.lane.b32.xlu0 %v208_v31, 264  ;;  %159 = vbcast.lane.b32.xlu1 %v153_v29, 264 }
 0x27d   :  { %225 = vbcast.lane.b32.xlu0 %v219_v34, 264  ;;  %166 = vbcast.lane.b32.xlu1 %v164_v35, 256 }
 0x281   :  { %236 = vbcast.lane.b32.xlu0 %v230_v37, 264  ;;  %170 = vbcast.lane.b32.xlu1 %v164_v35, 264  ;;  %v53_v35 = vld [vmem:[%s967_s4 + $0x68] sm:$0xff] }
 0x285   :  { %177 = vbcast.lane.b32.xlu1 %v175_v28, 256 }
 0x289   :  { %188 = vbcast.lane.b32.xlu1 %v186_v39, 256 }
 0x28d   :  { %192 = vbcast.lane.b32.xlu1 %v186_v39, 264 }
 0x291   :  { %199 = vbcast.lane.b32.xlu1 %v197_v41, 256 }
 0x295   :  { %203 = vbcast.lane.b32.xlu1 %v197_v41, 264 }
 0x299   :  { %210 = vbcast.lane.b32.xlu1 %v208_v31, 256  ;;  %v50_v31 = vld [vmem:[%s967_s4 + $0x50] sm:$0xff] }
 0x29d   :  { %221 = vbcast.lane.b32.xlu1 %v219_v34, 256 }
 0x2a1   :  { %232 = vbcast.lane.b32.xlu1 %v230_v37, 256 }
 0x2e7   :  { %v156_v44 = vpop.permute.xlu1 %155  ;;  %v182_v55 = vpop.permute.xlu0 %181 }
 0x2e8   :  { %v243_v63 = vmul.f32 %v182_v55, %v45_v54  ;;  %v238_v2 = vmul.f32 %v156_v44, %v40_v57  ;;  %v52_v44 = vld [vmem:[%s967_s4 + $0x60] sm:$0xff] }
 0x2ea   :  { %v274_v11 = vsel %vm254_vm3, %v243_v63, 0.0  ;;  %v255_v16 = vsel %vm254_vm3, %v238_v2, 0.0 }
 0x2eb   :  { %v160_v45 = vpop.permute.xlu1 %159  ;;  %v215_v12 = vpop.permute.xlu0 %214 }
 0x2ec   :  { %v239_v61 = vmul.f32 %v160_v45, %v41_v51  ;;  %v249_v32 = vmul.f32 %v215_v12, %v51_v23 }
 0x2ee   :  { %v256_v8 = vsel %vm254_vm3, %v239_v61, 0.0  ;;  %v301_v45 = vsel %vm254_vm3, %v249_v32, 0.0 }
 0x2ef   :  { %v167_v46 = vpop.permute.xlu1 %166  ;;  %v257_v19 = vadd.f32 %v256_v8, %v255_v16  ;;  %v226_v29 = vpop.permute.xlu0 %225 }
 0x2f0   :  { %v240_v62 = vmul.f32 %v167_v46, %v42_v52  ;;  %v251_v46 = vmul.f32 %v226_v29, %v53_v35  ;;  %v38_v35 = vld [vmem:[%s968_s2] sm:$0xff] }
 0x2f1   :  { %v258_v28 = vrot.slane %v257_v19, 4  ;;  %427 = vrot.lane.b32.xlu0 %v38_v35, %s734_s21 }
 0x2f2   :  { %v264_v9 = vsel %vm254_vm3, %v240_v62, 0.0 }
 0x2f3   :  { %v171_v47 = vpop.permute.xlu1 %170  ;;  %v259_v41 = vadd.f32 %v258_v28, %v257_v19 }
 0x2f4   :  { %v241_v56 = vmul.f32 %v171_v47, %v43_v49  ;;  %v237_v49 = vpop.permute.xlu0 %236 }
 0x2f6   :  { %v265_v3 = vsel %vm254_vm3, %v241_v56, 0.0  ;;  %v260_v56 = vrot.slane %v259_v41, 2 }
 0x2f7   :  { %v178_v48 = vpop.permute.xlu1 %177  ;;  %v266_v13 = vadd.f32 %v265_v3, %v264_v9 }
 0x2f8   :  { %v242_v58 = vmul.f32 %v178_v48, %v44_v50  ;;  %v55_v48 = vld [vmem:[%s967_s4 + $0x78] sm:$0xff]  ;;  %v261_v8 = vadd.f32 %v260_v56, %v259_v41  ;;  %v714_v41 = vld [vmem:[%s969_s7 + $0x10] sm:$0xff]   ;;  %v629_v56 = vld [vmem:[%s965_s9 + $0x1] ss:$0 sm:$0xff] }
 0x2f9   :  { %v267_v24 = vrot.slane %v266_v13, 4  ;;  %v253_v61 = vmul.f32 %v237_v49, %v55_v48 }
 0x2fa   :  { %v273_v7 = vsel %vm254_vm3, %v242_v58, 0.0 }
 0x2fb   :  { %v189_v53 = vpop.permute.xlu1 %188  ;;  %v275_v17 = vadd.f32 %v274_v11, %v273_v7  ;;  %v268_v36 = vadd.f32 %v267_v24, %v266_v13  ;;  %v319_v12 = vsel %vm254_vm3, %v253_v61, 0.0 }
 0x2fc   :  { %v244_v4 = vmul.f32 %v189_v53, %v46_v59  ;;  %v54_v59 = vld [vmem:[%s967_s4 + $0x70] sm:$0xff] }
 0x2fd   :  { %v276_v26 = vrot.slane %v275_v17, 4  ;;  %v269_v50 = vrot.slane %v268_v36, 2 }
 0x2fe   :  { %v282_v18 = vsel %vm254_vm3, %v244_v4, 0.0 }
 0x2ff   :  { %v193_v0 = vpop.permute.xlu1 %192  ;;  %v277_v39 = vadd.f32 %v276_v26, %v275_v17 }
 0x300   :  { %v245_v6 = vmul.f32 %v193_v0, %v47_v60  ;;  %v310_v60 = vsel %vm254_vm3, %v251_v46, 0.0  ;;  %v270_v0 = vadd.f32 %v269_v50, %v268_v36  ;;  %v713_v36 = vld [vmem:[%s969_s7 + $0x18] sm:$0xff]  }
 0x301   :  { %v278_v54 = vrot.slane %v277_v39, 2  ;;  %682 = vmatpush3.bf16.msra.mxu0 %v713_v36 }
 0x302   :  { %v283_v10 = vsel %vm254_vm3, %v245_v6, 0.0  ;;  %683 = vmatprep.subr.bf16.mxu0 %v731_v1 }
 0x303   :  { %v200_v15 = vpop.permute.xlu1 %199  ;;  %v284_v20 = vadd.f32 %v283_v10, %v282_v18  ;;  %v279_v6 = vadd.f32 %v278_v54, %v277_v39  ;;  %v715_v54 = vld [vmem:[%s969_s7 + $0x8] sm:$0xff]  }
 0x304   :  { %v246_v22 = vmul.f32 %v200_v15, %v48_v14  ;;  %v271_v15 = vrot.slane %v270_v0, 1 }
 0x305   :  { %v285_v30 = vrot.slane %v284_v20, 4  ;;  %v280_v19 = vrot.slane %v279_v6, 1  ;;  %684 = vmatpush3.bf16.msra.mxu0 %v714_v41 }
 0x306   :  { %v291_v33 = vsel %vm254_vm3, %v246_v22, 0.0  ;;  %v272_v26 = vadd.f32 %v271_v15, %v270_v0  ;;  %685 = vmatprep.subr.bf16.mxu0 %v731_v1 }
 0x307   :  { %v204_v25 = vpop.permute.xlu1 %203  ;;  %v286_v42 = vadd.f32 %v285_v30, %v284_v20  ;;  %v712_v20 = vld [vmem:[%s966_s6] sm:$0xff]   ;;  %v281_v30 = vadd.f32 %v280_v19, %v279_v6 }
 0x308   :  { %v247_v27 = vmul.f32 %v204_v25, %v49_v21  ;;  %v262_v21 = vrot.slane %v261_v8, 1  ;;  %676 = vmatpush3.bf16.msra.mxu1 %v712_v20 }
 0x309   :  { %v287_v57 = vrot.slane %v286_v42, 2  ;;  %693 = vmatprep.subr.bf16.mxu1 %v731_v1  ;;  %686 = vmatpush3.bf16.msra.mxu0 %v715_v54 }
 0x30a   :  { %v292_v34 = vsel %vm254_vm3, %v247_v27, 0.0  ;;  %687 = vmatprep.subr.bf16.mxu0 %v731_v1 }
 0x30b   :  { %v293_v37 = vadd.f32 %v292_v34, %v291_v33  ;;  %v211_v38 = vpop.permute.xlu1 %210  ;;  %v288_v9 = vadd.f32 %v287_v57, %v286_v42 }
 0x30c   :  { %v248_v40 = vmul.f32 %v211_v38, %v50_v31  ;;  %v263_v31 = vadd.f32 %v262_v21, %v261_v8  ;;  %v717_v21 = vld [vmem:[%s971_s8 + $0x8] sm:$0xff]  }
 0x30d   :  { %v294_v43 = vrot.slane %v293_v37, 4  ;;  %v289_v22 = vrot.slane %v288_v9, 1 }
 0x30e   :  { %v300_v47 = vsel %vm254_vm3, %v248_v40, 0.0  ;;  %v336_v38 = vsel %vm335_vm4, %v272_v26, %v263_v31 }
 0x30f   :  { %v295_v51 = vadd.f32 %v294_v43, %v293_v37  ;;  %v302_v52 = vadd.f32 %v301_v45, %v300_v47  ;;  %v222_v53 = vpop.permute.xlu1 %221  ;;  %v290_v32 = vadd.f32 %v289_v22, %v288_v9  ;;  %v338_v43 = vsel %vm337_vm5, %v281_v30, %v336_v38  ;;  %v718_v22 = vld [vmem:[%s971_s8] sm:$0xff]  }
 0x310   :  { %v250_v55 = vmul.f32 %v222_v53, %v52_v44 }
 0x311   :  { %v303_v58 = vrot.slane %v302_v52, 4  ;;  %v296_v62 = vrot.slane %v295_v51, 2  ;;  %v340_v45 = vsel %vm339_vm6, %v290_v32, %v338_v43 }
 0x312   :  { %v309_v63 = vsel %vm254_vm3, %v250_v55, 0.0  ;;  %v716_v55 = vld [vmem:[%s969_s7] sm:$0xff]  }
 0x313   :  { %v304_v2 = vadd.f32 %v303_v58, %v302_v52  ;;  %v311_v3 = vadd.f32 %v310_v60, %v309_v63  ;;  %v233_v4 = vpop.permute.xlu1 %232  ;;  %v297_v13 = vadd.f32 %v296_v62, %v295_v51  ;;  %688 = vmatpush3.bf16.msra.mxu0 %v716_v55 }
 0x314   :  { %v252_v7 = vmul.f32 %v233_v4, %v54_v59 }
 0x315   :  { %v305_v10 = vrot.slane %v304_v2, 2  ;;  %v312_v11 = vrot.slane %v311_v3, 4  ;;  %v298_v25 = vrot.slane %v297_v13, 1 }
 0x316   :  { %v318_v14 = vsel %vm254_vm3, %v252_v7, 0.0 }
 0x317   :  { %v306_v16 = vadd.f32 %v305_v10, %v304_v2  ;;  %v313_v17 = vadd.f32 %v312_v11, %v311_v3  ;;  %v320_v18 = vadd.f32 %v319_v12, %v318_v14  ;;  %v299_v37 = vadd.f32 %v298_v25, %v297_v13  ;;  %v634_v3 = vld [vmem:[%s965_s9 + $0x2] ss:$0 sm:$0xff] }
 0x319   :  { %v314_v23 = vrot.slane %v313_v17, 2  ;;  %v321_v24 = vrot.slane %v320_v18, 4  ;;  %v307_v27 = vrot.slane %v306_v16, 1  ;;  %v342_v46 = vsel %vm341_vm7, %v299_v37, %v340_v45 }
 0x31b   :  { %v315_v28 = vadd.f32 %v314_v23, %v313_v17  ;;  %v322_v29 = vadd.f32 %v321_v24, %v320_v18  ;;  %v308_v39 = vadd.f32 %v307_v27, %v306_v16 }
 0x31d   :  { %v316_v33 = vrot.slane %v315_v28, 1  ;;  %v323_v34 = vrot.slane %v322_v29, 2  ;;  %v344_v48 = vsel %vm343_vm8, %v308_v39, %v342_v46 }
 0x31f   :  { %v324_v40 = vadd.f32 %v323_v34, %v322_v29  ;;  %v317_v42 = vadd.f32 %v316_v33, %v315_v28  ;;  %v641_v28 = vld [vmem:[%s965_s9 + $0x3] ss:$0 sm:$0xff] }
 0x321   :  { %v325_v44 = vrot.slane %v324_v40, 1  ;;  %v346_v49 = vsel %vm345_vm9, %v317_v42, %v344_v48 }
 0x323   :  { %v326_v47 = vadd.f32 %v325_v44, %v324_v40 }
 0x325   :  { %v348_v50 = vsel %vm347_vm10, %v326_v47, %v346_v49 }
 0x326   :  { %349 = vrot.lane.b32.xlu1 %v348_v50, %s733_s15 }
 0x363   :  { %v428_v60 = vpop.permute.xlu0 %427 }
 0x398   :  { %v350_v51 = vpop.permute.xlu1 %349 }
 0x399   :  { %v352_v52 = vsel %vm64_vm1, %v817_v5, %v350_v51  ;;  %v39_v5 = vld [vmem:[%s970_s3] sm:$0xff] }
 0x39a   :  { %v353_v53 = vpack.c.bf16 %v352_v52, %v352_v52  ;;  %520 = vrot.lane.b32.xlu0 %v39_v5, %s734_s21 }
 0x39c   :  { %678 = vmatmul.mubr.msk.bf16.vlgmr.msra.gmra.mxu1 %vm95_vm2, %v353_v53 }
 0x39d   :  { %697 = vmatprep.mubr.msk.bf16.mxu1 %vm732_vm0, %v731_v1  ;;  %694 = vmatpush3.bf16.msra.mxu1 %v717_v21 }
 0x39e   :  { %695 = vmatprep.subr.bf16.mxu1 %v731_v1 }
 0x3a1   :  { %696 = vmatpush3.bf16.msra.mxu1 %v718_v22 }
 0x40c   :  { %v521_v17 = vpop.permute.xlu0 %520 }
 0x45c   :  { %v419_v57 = vpop.f32.mrf.mxu1 }
 0x45d   :  { %v420_v58 = vadd.f32 %v629_v56, %v419_v57 }
 0x45e   :  { %v679_v59 = vpop.f32.mrf.mxu1 }
 0x45f   :  { %v425_v61 = vmax.f32 %v420_v58, 0.0 }
 0x460   :  { %v422_v62 = vpop.f32.mrf.mxu1 }
 0x461   :  { %v430_v63 = vsel %vm254_vm3, %v425_v61, %v428_v60 }
 0x462   :  { %v431_v0 = vpack.c.bf16 %v430_v63, %v430_v63  ;;  %v680_v2 = vpop.f32.mrf.mxu1 }
 0x464   :  { %690 = vmatmul.mubr.msk.bf16.vlgmr.msra.gmra.mxu0 %vm468_vm11, %v431_v0 }
 0x524   :  { %v506_v4 = vpop.f32.mrf.mxu0 }
 0x525   :  { %v507_v6 = vadd.f32 %v634_v3, %v506_v4 }
 0x526   :  { %v691_v7 = vpop.f32.mrf.mxu0 }
 0x527   :  { %723 = vtanh.f32 %v507_v6  ;;  %v640_v11 = vmul.f32 -1.442695, %v507_v6 }
 0x528   :  { %v509_v8 = vpop.f32.mrf.mxu0 }
 0x529   :  { %725 = vpow2.f32 %v640_v11 }
 0x52a   :  { %v692_v9 = vpop.f32.mrf.mxu0 }
 0x534   :  { %v724_v10 = vpop.eup %723 }
 0x535   :  { %525 = vrot.lane.b32.xlu1 %v724_v10, %s735_s29 }
 0x536   :  { %v726_v12 = vpop.eup %725 }
 0x537   :  { %v515_v13 = vadd.f32 1.0, %v726_v12 }
 0x539   :  { %727 = vrcp.f32 %v515_v13 }
 0x546   :  { %v728_v14 = vpop.eup %727 }
 0x547   :  { %v523_v18 = vmul.f32 %v728_v14, %v521_v17 }
 0x5a7   :  { %v526_v15 = vpop.permute.xlu1 %525 }
 0x5a8   :  { %v528_v16 = vmul.f32 %v728_v14, %v526_v15 }
 0x5aa   :  { %530 = vrot.lane.b32.xlu1 %v528_v16, %s734_s21 }
 0x61c   :  { %v531_v19 = vpop.permute.xlu1 %530 }
 0x61d   :  { %v533_v20 = vadd.f32 %v531_v19, %v523_v18 }
 0x61f   :  { %729 = vtanh.f32 %v533_v20 }
 0x62c   :  { %v730_v23 = vpop.eup %729 }
 0x62d   :  { %536 = vrot.lane.b32.xlu0 %v730_v23, %s735_s29 }
 0x69f   :  { %v537_v24 = vpop.permute.xlu0 %536 }
 0x6a0   :  { %v539_v25 = vmul.f32 %v728_v14, %v537_v24 }
 0x6a2   :  { %v540_v26 = vpack.c.bf16 %v539_v25, %v539_v25  ;;  %608 = vrot.lane.b32.xlu0 %v539_v25, %s736_s14 }
 0x6a4   :  { %550 = vrot.lane.b32.xlu1 %v540_v26, %s734_s21 }
 0x6a8   :  { %612 = vrot.lane.b32.xlu1 %v533_v20, %s733_s15 }
 0x714   :  { %v609_v30 = vpop.permute.xlu0 %608 }
 0x716   :  { %v551_v27 = vpop.permute.xlu1 %550 }
 0x717   :  { %698 = vmatmul.mubr.msk.bf16.vlgmr.msra.gmra.mxu1 %vm254_vm3, %v551_v27 }
 0x71a   :  { %v613_v32 = vpop.permute.xlu1 %612 }
 0x7d7   :  { %v601_v29 = vpop.f32.mrf.mxu1 }
 0x7d8   :  { %v602_v1 = vadd.f32 %v641_v28, %v601_v29 }
 0x7d9   :  { %v699_v31 = vpop.f32.mrf.mxu1 }
 0x7da   :  { %v615_v33 = vsel %vm64_vm1, %v602_v1, %v609_v30 }
 0x7db   :  { %v616_v34 = vsel %vm95_vm2, %v615_v33, %v613_v32  ;;  %v604_v35 = vpop.f32.mrf.mxu1 }
 0x7dc   :  { %v618_v36 = vsel %vm617_vm12, %v616_v34, 0.0 }
 0x7dd   :  { %619 = vst [vmem:[%s972_s10] sm:$0xff] %v618_v36  ;;  %v700_v37 = vpop.f32.mrf.mxu1 }

</bundles_post_ra>
